<compile_context>
chip_gen: v7x
topology: tpu7x:2x2x1
jax: 0.10.0
libtpu: 0.0.40
codegen_flags: <defaults>
</compile_context>

<pallas_src>
from dataclasses import dataclass
from typing import Optional

import jax
import jax.numpy as jnp
from jax.experimental import pallas as pl
from jax.experimental.pallas import tpu as pltpu


@dataclass
class AbstractDisributionHeadConfig:
    d_model: int
    d_output: int
    horizon: int
    rank: int


@dataclass
class AbstractDisributionHeadOutput:
    logits: Optional[jnp.ndarray]
    loss: Optional[jnp.ndarray] = None


# Pad value for padded vocab columns.  Must be a large *finite* negative number:
# exp(-1e30 - m) underflows to 0 (so padded columns vanish from the softmax) while
# 0 * (-1e30) = 0 keeps sum(y*logits) finite.  Do NOT switch this to -inf (0*-inf = NaN).
_NEG_BIAS = -1e30


# --------------------------------------------------------------------------- kernels

def _online_ce_update(j, logits, y, m_sc, l_sc, syz_sc, sy_sc, nll_ref):
    """Flash-style online LSE + soft-target CE accumulation across the V grid axis."""
    @pl.when(j == 0)
    def _():
        m_sc[...] = jnp.full_like(m_sc, -jnp.inf)
        l_sc[...] = jnp.zeros_like(l_sc)
        syz_sc[...] = jnp.zeros_like(syz_sc)
        sy_sc[...] = jnp.zeros_like(sy_sc)

    m_prev = m_sc[...]
    m_new = jnp.maximum(m_prev, jnp.max(logits, axis=-1, keepdims=True))
    e = jnp.exp(logits - m_new)                                    # EUP
    l_sc[...] = l_sc[...] * jnp.exp(m_prev - m_new) + jnp.sum(e, axis=-1, keepdims=True)
    m_sc[...] = m_new

    # cross-entropy accumulators:  nll = sum(y) * lse - sum(y * logits)
    syz_sc[...] += jnp.sum(y * logits, axis=-1, keepdims=True)
    sy_sc[...] += jnp.sum(y, axis=-1, keepdims=True)

    @pl.when(j == pl.num_programs(1) - 1)
    def _():
        lse = m_sc[...] + jnp.log(l_sc[...])
        nll = sy_sc[...] * lse - syz_sc[...]                        # (TB, 1)
        nll_ref[...] = jnp.broadcast_to(nll, nll_ref.shape)         # lane-dense store


def _loss_kernel(x_ref, wt_ref, b_ref, y_ref, logits_ref, nll_ref,
                 m_sc, l_sc, syz_sc, sy_sc):
    # x_ref: (TB, D)  wt_ref: (D, TV)  b_ref: (1, TV)  y_ref: (TB, TV)
    logits = jnp.dot(x_ref[...], wt_ref[...], preferred_element_type=jnp.float32)
    logits = logits + b_ref[...].astype(jnp.float32)
    logits_ref[...] = logits.astype(logits_ref.dtype)
    _online_ce_update(pl.program_id(1), logits, y_ref[...].astype(jnp.float32),
                      m_sc, l_sc, syz_sc, sy_sc, nll_ref)


def _loss_only_kernel(x_ref, wt_ref, b_ref, y_ref, nll_ref,
                      m_sc, l_sc, syz_sc, sy_sc):
    # Training loss-only mode: no logits store / HBM writeback.
    logits = jnp.dot(x_ref[...], wt_ref[...], preferred_element_type=jnp.float32)
    logits = logits + b_ref[...].astype(jnp.float32)
    _online_ce_update(pl.program_id(1), logits, y_ref[...].astype(jnp.float32),
                      m_sc, l_sc, syz_sc, sy_sc, nll_ref)


def _logits_kernel(x_ref, wt_ref, b_ref, logits_ref):
    # Inference path (y is None): matmul + bias only.  Grid is (V outer, B inner) so
    # each weight slab is fetched from HBM once.
    logits = jnp.dot(x_ref[...], wt_ref[...], preferred_element_type=jnp.float32)
    logits_ref[...] = (logits + b_ref[...].astype(jnp.float32)).astype(logits_ref.dtype)


# --------------------------------------------------------------------------- helpers

def _round_up(x, m):
    return (x + m - 1) // m * m


def _pad2(a, shape, fill=0.0):
    pads = tuple((0, t - s) for s, t in zip(a.shape, shape))
    if all(p == (0, 0) for p in pads):
        return a
    return jnp.pad(a, pads, constant_values=fill)


def _device_vmem_bytes():
    """Per-TensorCore VMEM capacity (generation-aware; conservative fallback)."""
    try:
        info = pltpu.get_tpu_info()
        for attr in ("vmem_capacity_bytes", "vmem_size_bytes", "vmem_bytes"):
            v = getattr(info, attr, None)
            if v:
                return int(v)
    except Exception:
        pass
    try:
        kind = jax.devices()[0].device_kind.lower()
        if "v7" in kind:
            return 64 << 20
    except Exception:
        pass
    return 128 << 20


# --------------------------------------------------------------------------- module

class DistributionHead:
    """Concrete AbstractDisributionHead with a fused Pallas TPU forward."""

    def __init__(self, config: AbstractDisributionHeadConfig, key, param_dtype=jnp.float32):
        self.config = config
        kw, kb = jax.random.split(key)
        # output embeddings, PyTorch nn.Linear style: (d_output, d_model)
        self.weight = (jax.random.normal(kw, (config.d_output, config.d_model), jnp.float32)
                       * (1.0 / jnp.sqrt(config.d_model))).astype(param_dtype)
        self.bias = jax.random.normal(kb, (config.d_output,), jnp.float32) * 0.01
        # TODO(synk): `horizon` and `rank` are config-only in the abstract base; the
        # canonical single-step full-rank head does not use them.

        vmem = _device_vmem_bytes()
        self._is_small_vmem = vmem <= (64 << 20)          # v7x: 64 MiB/TC, 2 TCs
        if self._is_small_vmem:
            self._tile_budget = 26 << 20
            self._vmem_limit = 48 << 20                   # leave compiler headroom on v7x
            self._tb_cap_hw = 384
        else:                                             # v5e / v6e: 128 MiB VMEM
            self._tile_budget = 56 << 20
            self._vmem_limit = 100 << 20
            self._tb_cap_hw = 512

        self._refresh_cache()

    # ---- parameter management -------------------------------------------------

    def set_output_embeddings(self, new_embeddings):
        self.weight = new_embeddings
        self._refresh_cache()

    def get_output_embeddings(self):
        return self.weight

    def _refresh_cache(self):
        """Choose tiles and cache the padded, transposed weight / bias once."""
        V, D = self.weight.shape
        itemsize = jnp.dtype(self.weight.dtype).itemsize

        def est(tb, tv):
            return (2 * (D * tv * itemsize        # weight slab (double-buffered)
                         + tb * D * itemsize      # x tile
                         + tb * tv * 4            # y tile (worst case f32)
                         + tb * tv * itemsize     # logits out tile
                         + tv * 4                 # bias tile
                         + tb * 128 * 4)          # nll out tile
                    + 4 * tb * 128 * 4)           # accumulator scratch (lane-padded)

        tb_cap = self._tb_cap_hw
        TV = min(2048, _round_up(max(V, 1), 128))
        # Prefer keeping TB large (TB reduces the number of full weight re-streams);
        # shrink TV first, then TB as a last resort.
        while TV > 128 and est(tb_cap, TV) > self._tile_budget:
            TV = max(128, (TV // 2) // 128 * 128)
        while tb_cap > 8 and est(tb_cap, TV) > self._tile_budget:
            tb_cap = max(8, _round_up(tb_cap // 2, 8))

        self._TV = TV
        self._TB_cap = tb_cap
        Vp = _round_up(V, TV)
        self._Vp = Vp
        # Cached once: full-weight transpose + pad no longer happens per forward call.
        self._wt_p = _pad2(jnp.transpose(self.weight), (D, Vp))                       # (D, Vp)
        self._b_p = _pad2(self.bias.astype(jnp.float32).reshape(1, V), (1, Vp),
                          fill=_NEG_BIAS)                                              # (1, Vp)

    # ---- forward ----------------------------------------------------------------

    def forward(self, x, y: Optional[jnp.ndarray] = None,
                return_logits: bool = True) -> AbstractDisributionHeadOutput:
        B, D = x.shape
        V = self.config.d_output
        assert self.weight.shape == (V, D)

        compute_dtype = self.weight.dtype           # bf16 weights -> bf16 MXU operands
        logits_dtype = compute_dtype

        TB = min(self._TB_cap, _round_up(max(B, 1), 8))
        if self._is_small_vmem and B >= 16:
            # v7x has 2 TensorCores sharded over the "parallel" batch axis: make sure
            # there are at least two batch tiles so neither core idles.
            TB = min(TB, _round_up(-(-B // 2), 8))
        TV, Vp = self._TV, self._Vp
        Bp = _round_up(B, TB)
        grid_b, grid_v = Bp // TB, Vp // TV
        aligned = (Bp == B) and (Vp == V)

        # x is only padded / cast when actually needed (no-op for aligned f32 inputs).
        x_p = _pad2(x.astype(compute_dtype), (Bp, D))
        wt_p, b_p = self._wt_p, self._b_p

        if y is None:
            # Inference: V outer / B inner, both parallel -> each (D, TV) weight slab
            # is DMA'd once regardless of batch size.
            logits_p = pl.pallas_call(
                _logits_kernel,
                out_shape=jax.ShapeDtypeStruct((Bp, Vp), logits_dtype),
                grid=(grid_v, grid_b),
                in_specs=[pl.BlockSpec((TB, D), lambda j, i: (i, 0)),
                          pl.BlockSpec((D, TV), lambda j, i: (0, j)),
                          pl.BlockSpec((1, TV), lambda j, i: (0, j))],
                out_specs=pl.BlockSpec((TB, TV), lambda j, i: (i, j)),
                compiler_params=pltpu.CompilerParams(
                    dimension_semantics=("parallel", "parallel"),
                    vmem_limit_bytes=self._vmem_limit),
            )(x_p, wt_p, b_p)
            logits = logits_p if aligned else logits_p[:B, :V]
            return AbstractDisributionHeadOutput(logits=logits, loss=None)

        # Loss path: keep y in its native dtype (upcast in-kernel), pad only if ragged.
        # TODO(synk): for ragged V a masked last tile (broadcasted_iota) would avoid the
        # y pad copy entirely; kept as pad for simplicity since prod vocab sizes align.
        y_p = _pad2(y, (Bp, Vp))

        x_spec = pl.BlockSpec((TB, D), lambda i, j: (i, 0))
        w_spec = pl.BlockSpec((D, TV), lambda i, j: (0, j))
        b_spec = pl.BlockSpec((1, TV), lambda i, j: (0, j))
        y_spec = pl.BlockSpec((TB, TV), lambda i, j: (i, j))
        nll_spec = pl.BlockSpec((TB, 128), lambda i, j: (i, 0))
        scratch = [pltpu.VMEM((TB, 1), jnp.float32)] * 4
        cparams = pltpu.CompilerParams(
            dimension_semantics=("parallel", "arbitrary"),
            vmem_limit_bytes=self._vmem_limit)

        if return_logits:
            logits_p, nll_p = pl.pallas_call(
                _loss_kernel,
                out_shape=(jax.ShapeDtypeStruct((Bp, Vp), logits_dtype),
                           jax.ShapeDtypeStruct((Bp, 128), jnp.float32)),
                grid=(grid_b, grid_v),
                in_specs=[x_spec, w_spec, b_spec, y_spec],
                out_specs=(pl.BlockSpec((TB, TV), lambda i, j: (i, j)), nll_spec),
                scratch_shapes=scratch,
                compiler_params=cparams,
            )(x_p, wt_p, b_p, y_p)
            logits = logits_p if aligned else logits_p[:B, :V]
        else:
            # Training loss-only mode: no logits output / writeback at all.
            nll_p = pl.pallas_call(
                _loss_only_kernel,
                out_shape=jax.ShapeDtypeStruct((Bp, 128), jnp.float32),
                grid=(grid_b, grid_v),
                in_specs=[x_spec, w_spec, b_spec, y_spec],
                out_specs=nll_spec,
                scratch_shapes=scratch,
                compiler_params=cparams,
            )(x_p, wt_p, b_p, y_p)
            logits = None

        loss = jnp.mean(nll_p[:B, 0])   # padded batch rows excluded from the mean
        return AbstractDisributionHeadOutput(logits=logits, loss=loss)


# --------------------------------------------------------------------------- demo / checks

if __name__ == "__main__":
    key = jax.random.PRNGKey(0)
    k_param, k_x, k_y = jax.random.split(key, 3)

    # ---- f32 head, aligned shapes ------------------------------------------------
    cfg = AbstractDisributionHeadConfig(d_model=32, d_output=256, horizon=1, rank=4)
    head = DistributionHead(cfg, k_param)

    B = 8
    x = jax.random.normal(k_x, (B, cfg.d_model), jnp.float32)
    y = jax.nn.softmax(jax.random.normal(k_y, (B, cfg.d_output), jnp.float32), axis=-1)

    out = head.forward(x, y)
    jax.block_until_ready(out.logits)
    jax.block_until_ready(out.loss)

    w32 = head.weight.astype(jnp.float32)
    ref_logits = x @ w32.T + head.bias
    ref_loss = jnp.mean(-jnp.sum(y * jax.nn.log_softmax(ref_logits, axis=-1), axis=-1))
    assert out.logits.shape == (B, cfg.d_output)
    assert jnp.allclose(out.logits, ref_logits, atol=1e-4, rtol=1e-4)
    assert jnp.allclose(out.loss, ref_loss, atol=1e-4, rtol=1e-4)

    # ---- loss-only mode (skips the logits output entirely) ------------------------
    out_lo = head.forward(x, y, return_logits=False)
    jax.block_until_ready(out_lo.loss)
    assert out_lo.logits is None
    assert jnp.allclose(out_lo.loss, ref_loss, atol=1e-4, rtol=1e-4)

    # ---- y=None inference path (weight-resident V-outer grid) ---------------------
    out_inf = head.forward(x, None)
    jax.block_until_ready(out_inf.logits)
    assert out_inf.loss is None
    assert jnp.allclose(out_inf.logits, ref_logits, atol=1e-4, rtol=1e-4)

    # ---- ragged shapes: exercise batch/vocab padding + loss masking ---------------
    cfg_r = AbstractDisributionHeadConfig(d_model=32, d_output=200, horizon=1, rank=4)
    head_r = DistributionHead(cfg_r, k_param)
    Br = 5
    xr = jax.random.normal(k_x, (Br, cfg_r.d_model), jnp.float32)
    yr = jax.nn.softmax(jax.random.normal(k_y, (Br, cfg_r.d_output), jnp.float32), axis=-1)
    out_r = head_r.forward(xr, yr)
    jax.block_until_ready(out_r.loss)
    ref_logits_r = xr @ head_r.weight.astype(jnp.float32).T + head_r.bias
    ref_loss_r = jnp.mean(-jnp.sum(yr * jax.nn.log_softmax(ref_logits_r, axis=-1), axis=-1))
    assert out_r.logits.shape == (Br, cfg_r.d_output)
    assert jnp.allclose(out_r.logits, ref_logits_r, atol=1e-4, rtol=1e-4)
    assert jnp.allclose(out_r.loss, ref_loss_r, atol=1e-4, rtol=1e-4)

    out_r_inf = head_r.forward(xr, None)
    jax.block_until_ready(out_r_inf.logits)
    assert jnp.allclose(out_r_inf.logits, ref_logits_r, atol=1e-4, rtol=1e-4)

    # ---- bf16 weights: MXU-native operands, f32 accumulation, f32 softmax ---------
    head_bf = DistributionHead(cfg, k_param, param_dtype=jnp.bfloat16)
    out_bf = head_bf.forward(x, y)
    jax.block_until_ready(out_bf.loss)
    xb = x.astype(jnp.bfloat16).astype(jnp.float32)
    wb = head_bf.weight.astype(jnp.float32)
    ref_logits_bf = xb @ wb.T + head_bf.bias
    ref_loss_bf = jnp.mean(-jnp.sum(y * jax.nn.log_softmax(ref_logits_bf, axis=-1), axis=-1))
    assert out_bf.logits.dtype == jnp.bfloat16
    assert jnp.allclose(out_bf.logits.astype(jnp.float32), ref_logits_bf, atol=5e-2, rtol=5e-2)
    assert jnp.allclose(out_bf.loss, ref_loss_bf, atol=5e-3, rtol=5e-3)

    print("KERNEL_OK")
</pallas_src>

<mosaic_0001>
module attributes {stable_mosaic.version = 11 : i64} {
  func.func @_loss_kernel(%arg0: i32, %arg1: i32, %arg2: memref<8x32xf32, #tpu.memory_space<vmem>>, %arg3: memref<32x256xf32, #tpu.memory_space<vmem>>, %arg4: memref<1x256xf32, #tpu.memory_space<vmem>>, %arg5: memref<8x256xf32, #tpu.memory_space<vmem>>, %arg6: memref<8x256xf32, #tpu.memory_space<vmem>>, %arg7: memref<8x128xf32, #tpu.memory_space<vmem>>, %arg8: memref<8x1xf32, #tpu.memory_space<vmem>>, %arg9: memref<8x1xf32, #tpu.memory_space<vmem>>, %arg10: memref<8x1xf32, #tpu.memory_space<vmem>>, %arg11: memref<8x1xf32, #tpu.memory_space<vmem>>) attributes {dimension_semantics = [#tpu.dimension_semantics<parallel>, #tpu.dimension_semantics<arbitrary>], iteration_bounds = array<i64: 1, 1>, scalar_prefetch = 0 : i64, scratch_operands = 4 : i64, tpu.core_type = #tpu.core_type<tc>, window_params = [{transform_indices = @transform_0, window_bounds = array<i64: 8, 32>}, {transform_indices = @transform_1, window_bounds = array<i64: 32, 256>}, {transform_indices = @transform_2, window_bounds = array<i64: 1, 256>}, {transform_indices = @transform_3, window_bounds = array<i64: 8, 256>}, {transform_indices = @transform_4, window_bounds = array<i64: 8, 256>}, {transform_indices = @transform_5, window_bounds = array<i64: 8, 128>}]} {
    %c0 = arith.constant 0 : index
    %c0_0 = arith.constant 0 : index
    %0 = vector.load %arg2[%c0, %c0_0] : memref<8x32xf32, #tpu.memory_space<vmem>>, vector<8x32xf32>
    %c0_1 = arith.constant 0 : index
    %c0_2 = arith.constant 0 : index
    %1 = vector.load %arg3[%c0_1, %c0_2] : memref<32x256xf32, #tpu.memory_space<vmem>>, vector<32x256xf32>
    %cst = arith.constant dense<0.000000e+00> : vector<8x256xf32>
    %2 = tpu.matmul %0, %1, %cst {dimension_numbers = #tpu.dot_dimension_numbers<[1], [0], [0], [1], [0, 0, 1, 1], [], []>} : vector<8x32xf32>, vector<32x256xf32>, vector<8x256xf32> -> vector<8x256xf32>
    %c0_3 = arith.constant 0 : index
    %c0_4 = arith.constant 0 : index
    %3 = vector.load %arg4[%c0_3, %c0_4] : memref<1x256xf32, #tpu.memory_space<vmem>>, vector<1x256xf32>
    %4 = vector.broadcast %3 : vector<1x256xf32> to vector<8x256xf32>
    %5 = arith.addf %2, %4 : vector<8x256xf32>
    %c0_5 = arith.constant 0 : index
    %c0_6 = arith.constant 0 : index
    %6 = vector.load %arg6[%c0_5, %c0_6] : memref<8x256xf32, #tpu.memory_space<vmem>>, vector<8x256xf32>
    tpu.vector_store %arg6[%c0_5, %c0_6], %5 {strides = array<i32>} : memref<8x256xf32, #tpu.memory_space<vmem>>, vector<8x256xf32>,
    %c0_7 = arith.constant 0 : index
    %c0_8 = arith.constant 0 : index
    %7 = vector.load %arg5[%c0_7, %c0_8] : memref<8x256xf32, #tpu.memory_space<vmem>>, vector<8x256xf32>
    %c0_i32 = arith.constant 0 : i32
    %8 = arith.cmpi eq, %arg1, %c0_i32 : i32
    %9 = arith.extui %8 : i1 to i32
    %c0_i32_9 = arith.constant 0 : i32
    %10 = arith.cmpi ne, %9, %c0_i32_9 : i32
    scf.if %10 {
      %cst_32 = arith.constant 0xFF800000 : f32
      %41 = vector.broadcast %cst_32 : f32 to vector<8x1xf32>
      %c0_33 = arith.constant 0 : index
      %c0_34 = arith.constant 0 : index
      %42 = vector.load %arg8[%c0_33, %c0_34] : memref<8x1xf32, #tpu.memory_space<vmem>>, vector<8x1xf32>
      tpu.vector_store %arg8[%c0_33, %c0_34], %41 {strides = array<i32>} : memref<8x1xf32, #tpu.memory_space<vmem>>, vector<8x1xf32>,
      %cst_35 = arith.constant 0.000000e+00 : f32
      %43 = vector.broadcast %cst_35 : f32 to vector<8x1xf32>
      %c0_36 = arith.constant 0 : index
      %c0_37 = arith.constant 0 : index
      %44 = vector.load %arg9[%c0_36, %c0_37] : memref<8x1xf32, #tpu.memory_space<vmem>>, vector<8x1xf32>
      tpu.vector_store %arg9[%c0_36, %c0_37], %43 {strides = array<i32>} : memref<8x1xf32, #tpu.memory_space<vmem>>, vector<8x1xf32>,
      %cst_38 = arith.constant 0.000000e+00 : f32
      %45 = vector.broadcast %cst_38 : f32 to vector<8x1xf32>
      %c0_39 = arith.constant 0 : index
      %c0_40 = arith.constant 0 : index
      %46 = vector.load %arg10[%c0_39, %c0_40] : memref<8x1xf32, #tpu.memory_space<vmem>>, vector<8x1xf32>
      tpu.vector_store %arg10[%c0_39, %c0_40], %45 {strides = array<i32>} : memref<8x1xf32, #tpu.memory_space<vmem>>, vector<8x1xf32>,
      %cst_41 = arith.constant 0.000000e+00 : f32
      %47 = vector.broadcast %cst_41 : f32 to vector<8x1xf32>
      %c0_42 = arith.constant 0 : index
      %c0_43 = arith.constant 0 : index
      %48 = vector.load %arg11[%c0_42, %c0_43] : memref<8x1xf32, #tpu.memory_space<vmem>>, vector<8x1xf32>
      tpu.vector_store %arg11[%c0_42, %c0_43], %47 {strides = array<i32>} : memref<8x1xf32, #tpu.memory_space<vmem>>, vector<8x1xf32>,
    } else {
    }
    %c0_10 = arith.constant 0 : index
    %c0_11 = arith.constant 0 : index
    %11 = vector.load %arg8[%c0_10, %c0_11] : memref<8x1xf32, #tpu.memory_space<vmem>>, vector<8x1xf32>
    %cst_12 = arith.constant dense<0xFF800000> : vector<8xf32>
    %12 = vector.multi_reduction <maximumf>, %5, %cst_12 [1] : vector<8x256xf32> to vector<8xf32>
    %13 = vector.shape_cast %12 : vector<8xf32> to vector<8x1xf32>
    %14 = arith.maximumf %11, %13 : vector<8x1xf32>
    %15 = vector.broadcast %14 : vector<8x1xf32> to vector<8x256xf32>
    %16 = arith.subf %5, %15 : vector<8x256xf32>
    %17 = math.exp %16 : vector<8x256xf32>
    %c0_13 = arith.constant 0 : index
    %c0_14 = arith.constant 0 : index
    %18 = vector.load %arg9[%c0_13, %c0_14] : memref<8x1xf32, #tpu.memory_space<vmem>>, vector<8x1xf32>
    %19 = arith.subf %11, %14 : vector<8x1xf32>
    %20 = math.exp %19 : vector<8x1xf32>
    %21 = arith.mulf %18, %20 : vector<8x1xf32>
    %cst_15 = arith.constant dense<0.000000e+00> : vector<8xf32>
    %22 = vector.multi_reduction <add>, %17, %cst_15 [1] : vector<8x256xf32> to vector<8xf32>
    %23 = vector.shape_cast %22 : vector<8xf32> to vector<8x1xf32>
    %24 = arith.addf %21, %23 : vector<8x1xf32>
    %c0_16 = arith.constant 0 : index
    %c0_17 = arith.constant 0 : index
    %25 = vector.load %arg9[%c0_16, %c0_17] : memref<8x1xf32, #tpu.memory_space<vmem>>, vector<8x1xf32>
    tpu.vector_store %arg9[%c0_16, %c0_17], %24 {strides = array<i32>} : memref<8x1xf32, #tpu.memory_space<vmem>>, vector<8x1xf32>,
    %c0_18 = arith.constant 0 : index
    %c0_19 = arith.constant 0 : index
    %26 = vector.load %arg8[%c0_18, %c0_19] : memref<8x1xf32, #tpu.memory_space<vmem>>, vector<8x1xf32>
    tpu.vector_store %arg8[%c0_18, %c0_19], %14 {strides = array<i32>} : memref<8x1xf32, #tpu.memory_space<vmem>>, vector<8x1xf32>,
    %c0_20 = arith.constant 0 : index
    %c0_21 = arith.constant 0 : index
    %27 = vector.load %arg10[%c0_20, %c0_21] : memref<8x1xf32, #tpu.memory_space<vmem>>, vector<8x1xf32>
    %28 = arith.mulf %7, %5 : vector<8x256xf32>
    %cst_22 = arith.constant dense<0.000000e+00> : vector<8xf32>
    %29 = vector.multi_reduction <add>, %28, %cst_22 [1] : vector<8x256xf32> to vector<8xf32>
    %30 = vector.shape_cast %29 : vector<8xf32> to vector<8x1xf32>
    %31 = arith.addf %27, %30 : vector<8x1xf32>
    %c0_23 = arith.constant 0 : index
    %c0_24 = arith.constant 0 : index
    %32 = vector.load %arg10[%c0_23, %c0_24] : memref<8x1xf32, #tpu.memory_space<vmem>>, vector<8x1xf32>
    tpu.vector_store %arg10[%c0_23, %c0_24], %31 {strides = array<i32>} : memref<8x1xf32, #tpu.memory_space<vmem>>, vector<8x1xf32>,
    %c0_25 = arith.constant 0 : index
    %c0_26 = arith.constant 0 : index
    %33 = vector.load %arg11[%c0_25, %c0_26] : memref<8x1xf32, #tpu.memory_space<vmem>>, vector<8x1xf32>
    %cst_27 = arith.constant dense<0.000000e+00> : vector<8xf32>
    %34 = vector.multi_reduction <add>, %7, %cst_27 [1] : vector<8x256xf32> to vector<8xf32>
    %35 = vector.shape_cast %34 : vector<8xf32> to vector<8x1xf32>
    %36 = arith.addf %33, %35 : vector<8x1xf32>
    %c0_28 = arith.constant 0 : index
    %c0_29 = arith.constant 0 : index
    %37 = vector.load %arg11[%c0_28, %c0_29] : memref<8x1xf32, #tpu.memory_space<vmem>>, vector<8x1xf32>
    tpu.vector_store %arg11[%c0_28, %c0_29], %36 {strides = array<i32>} : memref<8x1xf32, #tpu.memory_space<vmem>>, vector<8x1xf32>,
    %c0_i32_30 = arith.constant 0 : i32
    %38 = arith.cmpi eq, %arg1, %c0_i32_30 : i32
    %39 = arith.extui %38 : i1 to i32
    %c0_i32_31 = arith.constant 0 : i32
    %40 = arith.cmpi ne, %39, %c0_i32_31 : i32
    scf.if %40 {
      %c0_32 = arith.constant 0 : index
      %c0_33 = arith.constant 0 : index
      %41 = vector.load %arg8[%c0_32, %c0_33] : memref<8x1xf32, #tpu.memory_space<vmem>>, vector<8x1xf32>
      %c0_34 = arith.constant 0 : index
      %c0_35 = arith.constant 0 : index
      %42 = vector.load %arg9[%c0_34, %c0_35] : memref<8x1xf32, #tpu.memory_space<vmem>>, vector<8x1xf32>
      %43 = math.log %42 : vector<8x1xf32>
      %44 = arith.addf %41, %43 : vector<8x1xf32>
      %c0_36 = arith.constant 0 : index
      %c0_37 = arith.constant 0 : index
      %45 = vector.load %arg11[%c0_36, %c0_37] : memref<8x1xf32, #tpu.memory_space<vmem>>, vector<8x1xf32>
      %46 = arith.mulf %45, %44 : vector<8x1xf32>
      %c0_38 = arith.constant 0 : index
      %c0_39 = arith.constant 0 : index
      %47 = vector.load %arg10[%c0_38, %c0_39] : memref<8x1xf32, #tpu.memory_space<vmem>>, vector<8x1xf32>
      %48 = arith.subf %46, %47 : vector<8x1xf32>
      %49 = vector.shape_cast %48 : vector<8x1xf32> to vector<8x1xf32>
      %50 = vector.broadcast %49 : vector<8x1xf32> to vector<8x128xf32>
      %c0_40 = arith.constant 0 : index
      %c0_41 = arith.constant 0 : index
      %51 = vector.load %arg7[%c0_40, %c0_41] : memref<8x128xf32, #tpu.memory_space<vmem>>, vector<8x128xf32>
      tpu.vector_store %arg7[%c0_40, %c0_41], %50 {strides = array<i32>} : memref<8x128xf32, #tpu.memory_space<vmem>>, vector<8x128xf32>,
    } else {
    }
    return
  }
  func.func @transform_0(%arg0: i32, %arg1: i32) -> (i32, i32) {
    %c0_i32 = arith.constant 0 : i32
    %c0_i32_0 = arith.constant 0 : i32
    return %arg0, %c0_i32 : i32, i32
  }
  func.func @transform_1(%arg0: i32, %arg1: i32) -> (i32, i32) {
    %c0_i32 = arith.constant 0 : i32
    %c0_i32_0 = arith.constant 0 : i32
    return %c0_i32, %arg1 : i32, i32
  }
  func.func @transform_2(%arg0: i32, %arg1: i32) -> (i32, i32) {
    %c0_i32 = arith.constant 0 : i32
    %c0_i32_0 = arith.constant 0 : i32
    return %c0_i32, %arg1 : i32, i32
  }
  func.func @transform_3(%arg0: i32, %arg1: i32) -> (i32, i32) {
    %c0_i32 = arith.constant 0 : i32
    return %arg0, %arg1 : i32, i32
  }
  func.func @transform_4(%arg0: i32, %arg1: i32) -> (i32, i32) {
    %c0_i32 = arith.constant 0 : i32
    return %arg0, %arg1 : i32, i32
  }
  func.func @transform_5(%arg0: i32, %arg1: i32) -> (i32, i32) {
    %c0_i32 = arith.constant 0 : i32
    %c0_i32_0 = arith.constant 0 : i32
    return %arg0, %c0_i32 : i32, i32
  }
}

</mosaic_0001>

<bundles_post_ra>
// kernel: tpu_custom_call.1
= control target key start
LH: loop header
LB: loop body
LE: loop exit
PB: predicated region body
PF: predicated region fallthrough
CT: control target
= control target key end

     0   :  { %11 = vsyncpa [#allocation7], 0  ;;  %s563_s0 = inlined_call_operand.hbm [shape: f32[8,32], index: 0, kind: input, shape index: {}]   ;;  %s564_s1 = inlined_call_operand.hbm [shape: f32[32,256], index: 1, kind: input, shape index: {}]   ;;  %s565_s2 = inlined_call_operand.hbm [shape: f32[1,256], index: 2, kind: input, shape index: {}]   ;;  %s566_s3 = inlined_call_operand.hbm [shape: f32[8,256], index: 3, kind: input, shape index: {}]   ;;  %s567_s4 = inlined_call_operand.hbm [shape: f32[8,256], index: 4, kind: output, shape index: {0}]   ;;  %s568_s5 = inlined_call_operand.hbm [shape: f32[8,128], index: 5, kind: output, shape index: {1}]  }
   0x1   :  { %12 = vsyncpa [#allocation10], 0 }
   0x2   :  { %13 = vsyncpa [#allocation13], 0 }
   0x3   :  { %14 = vsyncpa [#allocation8], 0 }
   0x4   :  { %15 = vsyncpa [#allocation16], 0  ;;  %s442_s18 = smov [#allocation9]   ;;  %s300_s22 = scalar_lea.hbm %s564_s1, 1024 }
   0x5   :  { %s31_s19 = sshll.u32 %s442_s18, 4  ;;  %p301_p0 = scmp.ne.s32.totalorder %s564_s1, %s300_s22  ;;  %s32_s19 = int_to_ptr.vmem [resolvable:$true] %s31_s19 }
   0x6   :  { %p304_p1 = scmp.lt.u32.totalorder %s300_s22, %s564_s1 }
   0x8   :  { %p306_p2 = pnand %p304_p1, %p301_p0 }
   0xa   :  { %309 = shalt.err (!%p306_p2)
}
   0xb   :  { %s310_s27 = scalar_lea.vmem %s32_s19, 1024  ;;  %p315_p4 = scmp.lt.s32.totalorder %s32_s19, %s32_s19 }
   0xc   :  { %p311_p3 = scmp.ne.s32.totalorder %s32_s19, %s310_s27  ;;  %p316_p5 = scmp.lt.s32.totalorder %s310_s27, %s310_s27 }
   0xe   :  { %p317_p6 = por %p316_p5, %p315_p4 }
  0x10   :  { %p318_p7 = pnand %p317_p6, %p311_p3 }
  0x12   :  { %321 = shalt.err (!%p318_p7)
}
  0x13   :  { %s443_s28 = smov 256   ;;  %s444_s29 = smov 16  }
  0x14   :  { %37 = dma.hbm_to_vmem [thread:$0]  %s564_s1, 1024, %s32_s19, [#allocation10], %s443_s28, %s443_s28, %s444_s29  }
  0x15   :  { %s445_s7 = smov [#allocation6]   ;;  %s446_s9 = smov [#allocation11]  }
  0x16   :  { %s22_s8 = sshll.u32 %s445_s7, 4  ;;  %s44_s10 = sshll.u32 %s446_s9, 4  ;;  %s23_s8 = int_to_ptr.vmem [resolvable:$true] %s22_s8  ;;  %s45_s10 = int_to_ptr.vmem [resolvable:$true] %s44_s10 }
  0x17   :  { %s322_s13 = scalar_lea.hbm %s563_s0, 128 }
  0x18   :  { %p323_p8 = scmp.ne.s32.totalorder %s563_s0, %s322_s13  ;;  %p326_p9 = scmp.lt.u32.totalorder %s322_s13, %s563_s0 }
  0x1a   :  { %p328_p10 = pnand %p326_p9, %p323_p8 }
  0x1c   :  { %331 = shalt.err (!%p328_p10)
}
  0x1d   :  { %s332_s1 = scalar_lea.vmem %s23_s8, 128  ;;  %p337_p12 = scmp.lt.s32.totalorder %s23_s8, %s23_s8 }
  0x1e   :  { %p333_p11 = scmp.ne.s32.totalorder %s23_s8, %s332_s1  ;;  %p338_p13 = scmp.lt.s32.totalorder %s332_s1, %s332_s1 }
  0x20   :  { %p339_p0 = por %p338_p13, %p337_p12 }
  0x22   :  { %p340_p1 = pnand %p339_p0, %p333_p11 }
  0x24   :  { %343 = shalt.err (!%p340_p1)
}
  0x25   :  { %25 = dma.hbm_to_vmem [thread:$0]  %s563_s0, 128, %s23_s8, [#allocation7]  }
  0x26   :  { %s344_s22 = scalar_lea.hbm %s565_s2, 32 }
  0x27   :  { %p345_p2 = scmp.ne.s32.totalorder %s565_s2, %s344_s22  ;;  %p348_p3 = scmp.lt.u32.totalorder %s344_s22, %s565_s2 }
  0x29   :  { %p350_p4 = pnand %p348_p3, %p345_p2 }
  0x2b   :  { %353 = shalt.err (!%p350_p4)
}
  0x2c   :  { %s354_s27 = scalar_lea.vmem %s45_s10, 32  ;;  %p359_p6 = scmp.lt.s32.totalorder %s45_s10, %s45_s10 }
  0x2d   :  { %p355_p5 = scmp.ne.s32.totalorder %s45_s10, %s354_s27  ;;  %p360_p7 = scmp.lt.s32.totalorder %s354_s27, %s354_s27 }
  0x2f   :  { %p361_p8 = por %p360_p7, %p359_p6 }
  0x31   :  { %p362_p9 = pnand %p361_p8, %p355_p5 }
  0x33   :  { %365 = shalt.err (!%p362_p9)
}
  0x34   :  { %47 = dma.hbm_to_vmem [thread:$0]  %s565_s2, 32, %s45_s10, [#allocation10]  }
  0x35   :  { %s447_s29 = smov [#allocation12]   ;;  %s366_s8 = scalar_lea.hbm %s566_s3, 256 }
  0x36   :  { %s54_s30 = sshll.u32 %s447_s29, 4  ;;  %p367_p10 = scmp.ne.s32.totalorder %s566_s3, %s366_s8  ;;  %s55_s30 = int_to_ptr.vmem [resolvable:$true] %s54_s30 }
  0x37   :  { %p370_p11 = scmp.lt.u32.totalorder %s366_s8, %s566_s3 }
  0x39   :  { %p372_p12 = pnand %p370_p11, %p367_p10 }
  0x3b   :  { %375 = shalt.err (!%p372_p12)
}
  0x3c   :  { %s376_s14 = scalar_lea.vmem %s55_s30, 256  ;;  %p381_p0 = scmp.lt.s32.totalorder %s55_s30, %s55_s30 }
  0x3d   :  { %p377_p13 = scmp.ne.s32.totalorder %s55_s30, %s376_s14  ;;  %p382_p1 = scmp.lt.s32.totalorder %s376_s14, %s376_s14 }
  0x3f   :  { %p383_p2 = por %p382_p1, %p381_p0 }
  0x41   :  { %p384_p3 = pnand %p383_p2, %p377_p13 }
  0x43   :  { %387 = shalt.err (!%p384_p3)
}
  0x44   :  { %57 = dma.hbm_to_vmem [thread:$0]  %s566_s3, 256, %s55_s30, [#allocation13]  }
  0x45   :  { %432 = dma.done.wait [#allocation7], 128  }
  0x46   :  { %433 = vsyncadd [#allocation7], 4294967168 }
  0x47   :  { %434 = dma.done.wait [#allocation10], 1056  }
  0x48   :  { %435 = vsyncadd [#allocation10], 4294966240 }
  0x49   :  { %436 = dma.done.wait [#allocation13], 256  }
  0x4a   :  { %437 = vsyncadd [#allocation13], 4294967040  ;;  %vm174_vm0 = vcmask 7168   ;;  %v448_v0 = vmov 0.0   ;;  %v72_v1 = vld [vmem:[#allocation9 + $0x8] sm:$0xff]  ;;  %v74_v2 = vld [vmem:[#allocation9 + $0x18] sm:$0xff]  ;;  %v81_v15 = vlaneseq }
  0x4b   :  { %159 = vmatprep.mubr.f32.mxu0 %v448_v0  ;;  %176 = vst.msk [vmem:[#allocation3] sm:$0xff] %vm174_vm0, %v448_v0  ;;  %177 = vst.msk [vmem:[#allocation4] sm:$0xff] %vm174_vm0, %v448_v0  ;;  %v71_v3 = vld [vmem:[#allocation9] sm:$0xff]  ;;  %v271_v4 = vpack.c.bf16 %v74_v2, %v72_v1  ;;  %v73_v5 = vld [vmem:[#allocation9 + $0x10] sm:$0xff]  ;;  %vm91_vm1 = vcmask 261120   ;;  %v449_v14 = vmov -inf  }
  0x4c   :  { %178 = vst.msk [vmem:[#allocation5] sm:$0xff] %vm174_vm0, %v448_v0  ;;  %v76_v6 = vld [vmem:[#allocation9 + $0x28] sm:$0xff]  ;;  %v78_v7 = vld [vmem:[#allocation9 + $0x38] sm:$0xff]  ;;  %v273_v8 = vpack.c.bf16 %v73_v5, %v71_v3  ;;  %v75_v10 = vld [vmem:[#allocation9 + $0x20] sm:$0xff]  ;;  %v82_v16 = vshrl.u32 %v81_v15, 7  ;;  %v450_v27 = vmov 0  }
  0x4d   :  { %v275_v9 = vpack.c.bf16 %v78_v7, %v76_v6  ;;  %v77_v11 = vld [vmem:[#allocation9 + $0x30] sm:$0xff]  ;;  %272 = vmatprep.subr.bf16.mxu0 %v271_v4  ;;  %v70_v13 = vld [vmem:[#allocation6] sm:$0xff]  ;;  %175 = vst.msk [vmem:[#allocation2] sm:$0xff] %vm174_vm0, %v449_v14  ;;  %v79_v18 = vld [vmem:[#allocation11] sm:$0x3]  ;;  %290 = vset.pattern.permute.xlu0 %v450_v27  ;;  %s451_s3 = smov [#allocation14]  }
  0x4e   :  { %274 = vmatpush1.bf16.msra.mxu0 %v273_v8  ;;  %v277_v12 = vpack.c.bf16 %v77_v11, %v75_v10  ;;  %v83_v17 = vsub.s32 0, %v82_v16  ;;  %v87_v19 = vsub.s32 1, %v82_v16  ;;  %291 = vset.pattern.permute.xlu1 %v450_v27  ;;  %v168_v40 = vld [vmem:[#allocation12] sm:$0xff]  ;;  %v169_v41 = vld [vmem:[#allocation12 + $0x8] sm:$0xff]  ;;  %s245_s15 = sshll.u32 %s451_s3, 4  ;;  %s246_s15 = int_to_ptr.vmem [resolvable:$true] %s245_s15 }
  0x4f   :  { %276 = vmatprep.subr.bf16.mxu0 %v275_v9  ;;  %v216_v42 = vadd.f32 %v169_v41, %v168_v40  ;;  %s388_s16 = scalar_lea.vmem %s246_s15, 256  ;;  %p393_p5 = scmp.lt.s32.totalorder %s246_s15, %s246_s15 }
  0x50   :  { %v84_v20 = vrot.slane %v79_v18, %v83_v17  ;;  %v88_v21 = vrot.slane %v79_v18, %v87_v19  ;;  %p389_p4 = scmp.ne.s32.totalorder %s246_s15, %s388_s16  ;;  %p394_p6 = scmp.lt.s32.totalorder %s388_s16, %s388_s16 }
  0x52   :  { %278 = vmatpush1.bf16.msra.mxu0 %v277_v12  ;;  %v195_v48 = vld [vmem:[#allocation3] sm:$0xff]  ;;  %v207_v55 = vld [vmem:[#allocation4] sm:$0xff]  ;;  %p395_p7 = por %p394_p6, %p393_p5 }
  0x53   :  { %v215_v52 = vld [vmem:[#allocation5] sm:$0xff] }
  0x54   :  { %v179_v28 = vld [vmem:[#allocation2] sm:$0xff]  ;;  %p396_p8 = pnand %p395_p7, %p389_p4 }
  0x55   :  { %270 = vmatmul.mubr.msk.f32.vlgmr.msra.gmra.mrb[0].mxu0 %vm91_vm1, %v70_v13 }
 0x128   :  { %v161_v22 = vpop.f32.mrb[0].mxu0 }
 0x129   :  { %v162_v23 = vadd.f32 %v161_v22, %v84_v20  ;;  %v163_v24 = vpop.f32.mrb[1].mxu0 }
 0x12a   :  { %v164_v25 = vadd.f32 %v163_v24, %v88_v21 }
 0x12b   :  { %166 = vst [vmem:[#allocation14] sm:$0xff] %v162_v23  ;;  %v208_v43 = vmul.f32 %v168_v40, %v162_v23 }
 0x12c   :  { %167 = vst [vmem:[#allocation14 + $0x8] sm:$0xff] %v164_v25  ;;  %v180_v26 = vmax.f32 %v162_v23, %v164_v25  ;;  %v209_v44 = vmul.f32 %v169_v41, %v164_v25 }
 0x12e   :  { %181 = vmax.xlane.f32.xlu0 %v180_v26  ;;  %v210_v45 = vadd.f32 %v209_v44, %v208_v43 }
 0x1bb   :  { %v182_v29 = vpop.xlane.xlu0 %181 }
 0x1bc   :  { %v183_v30 = vmax.f32 %v179_v28, %v182_v29 }
 0x1be   :  { %v196_v31 = vsub.f32 %v179_v28, %v183_v30  ;;  %206 = vst.msk [vmem:[#allocation2] sm:$0xff] %vm174_vm0, %v183_v30  ;;  %186 = vperm.xlu0 %290, %v183_v30  }
 0x1c0   :  { %v197_v46 = vmul.f32 1.442695, %v196_v31 }
 0x1c5   :  { %v224_v61 = vld [vmem:[#allocation2] sm:$0xff] }
 0x23d   :  { %v187_v32 = vpop.permute.xlu0 %186 }
 0x23e   :  { %v189_v33 = vsub.f32 %v162_v23, %v187_v32  ;;  %v190_v34 = vsub.f32 %v164_v25, %v187_v32 }
 0x240   :  { %v191_v35 = vmul.f32 1.442695, %v189_v33  ;;  %v193_v36 = vmul.f32 1.442695, %v190_v34 }
 0x242   :  { %292 = vpow2.f32 %v191_v35 }
 0x243   :  { %294 = vpow2.f32 %v193_v36 }
 0x244   :  { %296 = vpow2.f32 %v197_v46 }
 0x24c   :  { %v293_v37 = vpop.eup %292 }
 0x24d   :  { %v295_v38 = vpop.eup %294 }
 0x24e   :  { %v200_v39 = vadd.f32 %v295_v38, %v293_v37  ;;  %v297_v47 = vpop.eup %296 }
 0x24f   :  { %v199_v49 = vmul.f32 %v297_v47, %v195_v48 }
 0x250   :  { %201 = vadd.xlane.f32.xlu1 %v200_v39 }
 0x254   :  { %217 = vadd.xlane.f32.xlu1 %v216_v42 }
 0x258   :  { %211 = vadd.xlane.f32.xlu1 %v210_v45 }
 0x2dd   :  { %v202_v50 = vpop.xlane.xlu1 %201 }
 0x2de   :  { %v203_v51 = vadd.f32 %v202_v50, %v199_v49 }
 0x2e0   :  { %205 = vst.msk [vmem:[#allocation3] sm:$0xff] %vm174_vm0, %v203_v51 }
 0x2e1   :  { %v218_v53 = vpop.xlane.xlu1 %217 }
 0x2e2   :  { %v219_v54 = vadd.f32 %v218_v53, %v215_v52 }
 0x2e4   :  { %220 = vst.msk [vmem:[#allocation5] sm:$0xff] %vm174_vm0, %v219_v54 }
 0x2e5   :  { %v212_v56 = vpop.xlane.xlu1 %211 }
 0x2e6   :  { %v213_v57 = vadd.f32 %v212_v56, %v207_v55 }
 0x2e7   :  { %v225_v58 = vld [vmem:[#allocation3] sm:$0xff] }
 0x2e8   :  { %214 = vst.msk [vmem:[#allocation4] sm:$0xff] %vm174_vm0, %v213_v57  ;;  %298 = vlog2.f32 %v225_v58 }
 0x2eb   :  { %v229_v63 = vld [vmem:[#allocation5] sm:$0xff] }
 0x2ef   :  { %v231_v1 = vld [vmem:[#allocation4] sm:$0xff] }
 0x2f2   :  { %v299_v59 = vpop.eup %298 }
 0x2f3   :  { %v227_v60 = vmul.f32 0.6931472, %v299_v59 }
 0x2f5   :  { %v228_v62 = vadd.f32 %v227_v60, %v224_v61 }
 0x2f7   :  { %v230_v0 = vmul.f32 %v229_v63, %v228_v62 }
 0x2f9   :  { %v232_v2 = vsub.f32 %v230_v0, %v231_v1 }
 0x2fb   :  { %235 = vperm.xlu1 %291, %v232_v2  }
 0x2fc   :  { %399 = shalt.err (!%p396_p8)
}
 0x2fd   :  { %s400_s18 = scalar_lea.hbm %s567_s4, 256 }
 0x2fe   :  { %p401_p9 = scmp.ne.s32.totalorder %s567_s4, %s400_s18  ;;  %p404_p10 = scmp.lt.u32.totalorder %s400_s18, %s567_s4 }
 0x300   :  { %p406_p11 = pnand %p404_p10, %p401_p9 }
 0x302   :  { %409 = shalt.err (!%p406_p11)
}
 0x303   :  { %248 = dma.vmem_to_hbm [thread:$0]  %s246_s15, 256, %s567_s4, [#allocation8]  }
 0x304   :  { %s452_s25 = smov [#allocation15]  }
 0x305   :  { %s255_s26 = sshll.u32 %s452_s25, 4  ;;  %s256_s26 = int_to_ptr.vmem [resolvable:$true] %s255_s26 }
 0x306   :  { %s410_s27 = scalar_lea.vmem %s256_s26, 128  ;;  %p415_p13 = scmp.lt.s32.totalorder %s256_s26, %s256_s26 }
 0x307   :  { %p411_p12 = scmp.ne.s32.totalorder %s256_s26, %s410_s27  ;;  %p416_p0 = scmp.lt.s32.totalorder %s410_s27, %s410_s27 }
 0x309   :  { %p417_p1 = por %p416_p0, %p415_p13 }
 0x30b   :  { %p418_p2 = pnand %p417_p1, %p411_p12 }
 0x37a   :  { %v236_v3 = vpop.permute.xlu1 %235 }
 0x37b   :  { %238 = vst [vmem:[#allocation15] sm:$0xff] %v236_v3 }
 0x37c   :  { %421 = shalt.err (!%p418_p2)
}
 0x37d   :  { %s422_s29 = scalar_lea.hbm %s568_s5, 128 }
 0x37e   :  { %p423_p3 = scmp.ne.s32.totalorder %s568_s5, %s422_s29  ;;  %p426_p4 = scmp.lt.u32.totalorder %s422_s29, %s568_s5 }
 0x380   :  { %p428_p5 = pnand %p426_p4, %p423_p3 }
 0x382   :  { %431 = shalt.err (!%p428_p5)
}
 0x383   :  { %258 = dma.vmem_to_hbm [thread:$0]  %s256_s26, 128, %s568_s5, [#allocation16]  }
 0x384   :  { %438 = dma.done.wait [#allocation8], 256  }
 0x385   :  { %439 = vsyncadd [#allocation8], 4294967040 }
 0x386   :  { %440 = dma.done.wait [#allocation16], 128  }
 0x387   :  { %441 = vsyncadd [#allocation16], 4294967168 }
 0x388   :  { %265 = vsyncpa [#allocation7], 1 }
 0x389   :  { %266 = vsyncpa [#allocation10], 1 }
 0x38a   :  { %267 = vsyncpa [#allocation13], 1 }
 0x38b   :  { %268 = vsyncpa [#allocation8], 1 }
 0x38c   :  { %269 = vsyncpa [#allocation16], 1 }

</bundles_post_ra>
